<compile_context>
chip_gen: v7x
topology: tpu7x:2x2x1
jax: 0.10.0
libtpu: 0.0.40
codegen_flags: <defaults>
</compile_context>

<pallas_src>
import math

import jax
import jax.numpy as jnp
from jax.experimental import pallas as pl
from jax.experimental.pallas import tpu as pltpu


# ----------------------------------------------------------------------------
# Buffer setup (plain JAX, done once at construction).
# ----------------------------------------------------------------------------
def _build_pe(d_model: int, max_len: int, dtype=jnp.float32) -> jnp.ndarray:
    """Sinusoidal positional-encoding table, shape [1, max_len, d_model].

    Robust to odd d_model (cos half gets the truncated div_term)."""
    position = jnp.arange(max_len, dtype=jnp.float32)[:, None]          # [max_len, 1]
    div_term = jnp.exp(
        jnp.arange(0, d_model, 2, dtype=jnp.float32) * (-math.log(10000.0) / d_model)
    )                                                                    # [ceil(d/2)]
    pe = jnp.zeros((max_len, d_model), dtype=jnp.float32)
    pe = pe.at[:, 0::2].set(jnp.sin(position * div_term))
    pe = pe.at[:, 1::2].set(jnp.cos(position * div_term[: d_model // 2]))
    return pe[None, :, :].astype(dtype)                                  # [1, max_len, d_model]


# ----------------------------------------------------------------------------
# Per-generation tuning knobs (selected once at import time, host-side).
# ----------------------------------------------------------------------------
def _vmem_budget():
    """(per-array tile bytes, scoped vmem_limit_bytes) by generation."""
    try:
        vmem = pltpu.get_tpu_info().vmem_capacity_bytes
    except Exception:
        vmem = None
    if vmem is not None and vmem >= 100 * 1024 * 1024:   # v5e / v6e (128 MiB VMEM)
        return 4 << 20, 48 << 20
    return 2 << 20, 32 << 20                             # v7x (64 MiB) / unknown


_TILE_BYTES, _VMEM_LIMIT = _vmem_budget()


def _sublane_multiple(itemsize: int) -> int:
    """Packed sublane granularity: 8 rows f32, 16 bf16, 32 int8/fp8."""
    return max(8, 8 * (4 // max(1, int(itemsize))))


def _choose_cols(s: int, d: int):
    """Lane-dense (rows, cols) factorization of the per-batch (s, d) slab."""
    n = s * d
    if n % 128 == 0:
        return n // 128, 128       # unmasked, lane-dense stores
    # TODO(synk): d_model not 128-friendly -> sub-128 lane tiles (masked stores);
    # fix at the model level by padding d_model to a multiple of 128.
    return s, d


def _pick_row_tile(rows: int, target_rows: int, packed: int) -> int:
    """Largest row tile <= target_rows, a multiple of `packed`, preferring
    exact divisors of `rows` (no ragged tail tile)."""
    if rows <= target_rows:
        return rows
    cap = max(packed, (target_rows // packed) * packed)
    cand = cap
    while cand >= packed:
        if rows % cand == 0:
            break
        cand -= packed
    if cand >= packed and rows % cand == 0 and cand * 4 >= cap:
        return cand                 # clean divisor, not degenerately small
    return cap                      # ragged-tail fallback


def _pick_batch_block(b: int, slab_bytes: int, target_bytes: int) -> int:
    """Whole per-batch slabs per tile (exact divisor of b)."""
    divisors = [d for d in range(b, 0, -1) if b % d == 0]
    fitting = [d for d in divisors if d * slab_bytes <= target_bytes] or [1]
    bb = fitting[0]
    # v7x has 2 TensorCores: prefer >= 2 parallel grid steps if tiles stay big enough.
    if b // bb < 2:
        for d in fitting:
            if b // d >= 2 and d * slab_bytes >= (256 << 10):
                return d
    return bb


# ----------------------------------------------------------------------------
# Kernel: broadcasted elementwise add (works for both tiling paths).
#   path A: x (tr, cols)        + pe (tr, cols)
#   path B: x (bb, rows, cols)  + pe (1, rows, cols)   (leading-dim broadcast)
# ----------------------------------------------------------------------------
def _pe_add_kernel(x_ref, pe_ref, o_ref):
    o_ref[...] = (x_ref[...] + pe_ref[...]).astype(o_ref.dtype)


@jax.jit
def positional_encoding_forward(x: jnp.ndarray, pe: jnp.ndarray) -> jnp.ndarray:
    """x: [batch, seq, d_model]; pe: [1, max_len, d_model]. Returns x + pe[:, :seq, :]."""
    b, s, d = x.shape
    pe_slice = pe[:, :s, :]                      # static slice, like pe[:, :x.size(1), :]
    if pe_slice.dtype != x.dtype:                # no-op when pe was built in the model dtype
        pe_slice = pe_slice.astype(x.dtype)

    itemsize = jnp.dtype(x.dtype).itemsize
    rows, cols = _choose_cols(s, d)
    packed = _sublane_multiple(itemsize)
    target_rows = max(packed, _TILE_BYTES // (cols * itemsize))

    # Pure layout plumbing: contiguous reshape of the per-batch slab.
    x_v = x.reshape(b, rows, cols)
    pe_v = pe_slice.reshape(1, rows, cols)

    if rows >= target_rows:
        # ---- Path A: large per-batch slab. Tile the row axis; batch innermost so the
        # broadcast pe tile keeps the same block index and stays VMEM-resident.
        tr = _pick_row_tile(rows, target_rows, packed)
        # v7x (2 TCs): avoid a single-step grid when the row axis splits cleanly.
        if b * pl.cdiv(rows, tr) < 2 and rows % (2 * packed) == 0:
            tr = rows // 2
        grid = (pl.cdiv(rows, tr), b)
        out = pl.pallas_call(
            _pe_add_kernel,
            out_shape=jax.ShapeDtypeStruct((b, rows, cols), x.dtype),
            grid_spec=pltpu.PrefetchScalarGridSpec(
                num_scalar_prefetch=0,
                grid=grid,
                in_specs=[
                    pl.BlockSpec((pl.Squeezed(), tr, cols), lambda si, bi: (bi, si, 0)),  # x
                    pl.BlockSpec((pl.Squeezed(), tr, cols), lambda si, bi: (0, si, 0)),   # pe (resident)
                ],
                out_specs=pl.BlockSpec((pl.Squeezed(), tr, cols), lambda si, bi: (bi, si, 0)),
            ),
            compiler_params=pltpu.CompilerParams(
                dimension_semantics=("parallel", "parallel"),
                vmem_limit_bytes=_VMEM_LIMIT,
            ),
        )(x_v, pe_v)
    else:
        # ---- Path B: small per-batch slab. Fold whole batch slabs into each tile and
        # keep the full pe slab as one constant-index VMEM block, broadcast in-kernel.
        slab_bytes = rows * cols * itemsize
        bb = _pick_batch_block(b, slab_bytes, _TILE_BYTES)
        grid = (b // bb,)
        out = pl.pallas_call(
            _pe_add_kernel,
            out_shape=jax.ShapeDtypeStruct((b, rows, cols), x.dtype),
            grid_spec=pltpu.PrefetchScalarGridSpec(
                num_scalar_prefetch=0,
                grid=grid,
                in_specs=[
                    pl.BlockSpec((bb, rows, cols), lambda bi: (bi, 0, 0)),   # x: bb whole slabs
                    pl.BlockSpec((1, rows, cols), lambda bi: (0, 0, 0)),     # pe: resident, broadcast
                ],
                out_specs=pl.BlockSpec((bb, rows, cols), lambda bi: (bi, 0, 0)),
            ),
            compiler_params=pltpu.CompilerParams(
                dimension_semantics=("parallel",),
                vmem_limit_bytes=_VMEM_LIMIT,
            ),
        )(x_v, pe_v)

    # NOTE: intentionally no input_output_aliases — without argument donation it would
    # trigger a defensive full copy of x (extra HBM pass) on this bandwidth-bound op.
    # TODO(synk): dropout p>0 is not implemented (module default p=0.0 -> identity);
    # for p>0 use pltpu.prng_seed + pltpu.stateful_bernoulli inside the kernel.
    return out.reshape(b, s, d)


class PositionalEncodingPallas:
    """Mirror of the PyTorch module (batch_first=True, dropout=0.0)."""

    def __init__(self, d_model: int, dropout: float = 0.0, max_len: int = 5000,
                 batch_first: bool = True, dtype=jnp.float32):
        assert batch_first, "This Pallas port implements the batch_first=True layout."
        self.batch_first = batch_first
        self.dropout = dropout
        # pe is built and stored in the model dtype so no per-call cast copy is needed.
        self.pe = _build_pe(d_model, max_len, dtype=dtype)   # buffer, [1, max_len, d_model]

    def __call__(self, x: jnp.ndarray) -> jnp.ndarray:
        return positional_encoding_forward(x, self.pe)


if __name__ == "__main__":
    # Small shapes consistent with the forward: [batch, seq, d_model]
    batch, seq, d_model = 2, 8, 32
    max_len = 64  # small max_len for the synthetic test (module default is 5000)

    key = jax.random.PRNGKey(0)
    x = jax.random.normal(key, (batch, seq, d_model), dtype=jnp.float32)

    module = PositionalEncodingPallas(d_model=d_model, dropout=0.0,
                                      max_len=max_len, batch_first=True)

    # Reference (pure JAX) — computed before the kernel call.
    ref = x + module.pe[:, :seq, :]

    out = module(x)
    out = jax.block_until_ready(out)

    assert out.shape == x.shape and out.dtype == x.dtype
    assert jnp.allclose(out, ref, atol=1e-6), "mismatch vs. reference"

    print("KERNEL_OK")
</pallas_src>

<mosaic_0001>
module attributes {stable_mosaic.version = 11 : i64} {
  func.func @_pe_add_kernel(%arg0: i32, %arg1: memref<2x2x128xf32, #tpu.memory_space<vmem>>, %arg2: memref<1x2x128xf32, #tpu.memory_space<vmem>>, %arg3: memref<2x2x128xf32, #tpu.memory_space<vmem>>) attributes {dimension_semantics = [#tpu.dimension_semantics<parallel>], iteration_bounds = array<i64: 1>, scalar_prefetch = 0 : i64, scratch_operands = 0 : i64, tpu.core_type = #tpu.core_type<tc>, window_params = [{transform_indices = @transform_0, window_bounds = array<i64: 2, 2, 128>}, {pipeline_mode = #tpu.pipeline_mode<synchronous>, transform_indices = @transform_1, window_bounds = array<i64: 1, 2, 128>}, {transform_indices = @transform_2, window_bounds = array<i64: 2, 2, 128>}]} {
    %c0 = arith.constant 0 : index
    %c0_0 = arith.constant 0 : index
    %c0_1 = arith.constant 0 : index
    %0 = vector.load %arg1[%c0, %c0_0, %c0_1] : memref<2x2x128xf32, #tpu.memory_space<vmem>>, vector<2x2x128xf32>
    %c0_2 = arith.constant 0 : index
    %c0_3 = arith.constant 0 : index
    %c0_4 = arith.constant 0 : index
    %1 = vector.load %arg2[%c0_2, %c0_3, %c0_4] : memref<1x2x128xf32, #tpu.memory_space<vmem>>, vector<1x2x128xf32>
    %2 = vector.broadcast %1 : vector<1x2x128xf32> to vector<2x2x128xf32>
    %3 = arith.addf %0, %2 : vector<2x2x128xf32>
    %c0_5 = arith.constant 0 : index
    %c0_6 = arith.constant 0 : index
    %c0_7 = arith.constant 0 : index
    %4 = vector.load %arg3[%c0_5, %c0_6, %c0_7] : memref<2x2x128xf32, #tpu.memory_space<vmem>>, vector<2x2x128xf32>
    tpu.vector_store %arg3[%c0_5, %c0_6, %c0_7], %3 {strides = array<i32>} : memref<2x2x128xf32, #tpu.memory_space<vmem>>, vector<2x2x128xf32>,
    return
  }
  func.func @transform_0(%arg0: i32) -> (i32, i32, i32) {
    %c0_i32 = arith.constant 0 : i32
    %c0_i32_0 = arith.constant 0 : i32
    %c0_i32_1 = arith.constant 0 : i32
    return %arg0, %c0_i32, %c0_i32_0 : i32, i32, i32
  }
  func.func @transform_1(%arg0: i32) -> (i32, i32, i32) {
    %c0_i32 = arith.constant 0 : i32
    %c0_i32_0 = arith.constant 0 : i32
    %c0_i32_1 = arith.constant 0 : i32
    %c0_i32_2 = arith.constant 0 : i32
    return %c0_i32, %c0_i32_0, %c0_i32_1 : i32, i32, i32
  }
  func.func @transform_2(%arg0: i32) -> (i32, i32, i32) {
    %c0_i32 = arith.constant 0 : i32
    %c0_i32_0 = arith.constant 0 : i32
    %c0_i32_1 = arith.constant 0 : i32
    return %arg0, %c0_i32, %c0_i32_0 : i32, i32, i32
  }
}

</mosaic_0001>

<bundles_post_ra>
// kernel: positional_encoding_forward.1
= control target key start
LH: loop header
LB: loop body
LE: loop exit
PB: predicated region body
PF: predicated region fallthrough
CT: control target
= control target key end

     0   :  { %s52_s0 = inlined_call_operand.vmem [shape: f32[2,2,128], index: 0, kind: input, shape index: {}]   ;;  %s53_s1 = inlined_call_operand.vmem [shape: f32[1,2,128], index: 1, kind: input, shape index: {}]   ;;  %s54_s2 = inlined_call_operand.vmem [shape: f32[2,2,128], index: 2, kind: output, shape index: {}]  }
   0x1   :  { %v11_v0 = vld [vmem:[%s52_s0] sm:$0x3]  ;;  %v12_v2 = vld [vmem:[%s52_s0 + $0x2] sm:$0x3] }
   0x2   :  { %v13_v1 = vld [vmem:[%s53_s1] sm:$0x3] }
   0x3   :  { %v14_v3 = vadd.f32 %v13_v1, %v11_v0  ;;  %v15_v4 = vadd.f32 %v13_v1, %v12_v2 }
   0x5   :  { %16 = vst [vmem:[%s54_s2] sm:$0x3] %v14_v3  ;;  %17 = vst [vmem:[%s54_s2 + $0x2] sm:$0x3] %v15_v4 }

</bundles_post_ra>
